<compile_context>
chip_gen: v6e
topology: v6e:2x2x1
jax: 0.10.0
libtpu: 0.0.40
codegen_flags: <defaults>
</compile_context>

<pallas_src>
import jax
import jax.numpy as jnp
from jax.experimental import pallas as pl
from jax.experimental.pallas import tpu as pltpu

SMOOTH_NR = 1e-5
SMOOTH_DR = 1e-5

# get_current_consistency_weight is not defined in the provided module; use
# the standard Mean-Teacher sigmoid ramp-up with deterministic constants.
# TODO(synk): original globals (consistency, consistency_rampup) unknown.
CONSISTENCY = 0.1
CONSISTENCY_RAMPUP = 40.0

_VMEM_LIMIT = 32 * 1024 * 1024          # safe on v5e / v6e / v7x
_TARGET_BLOCK_BYTES = 2 * 1024 * 1024   # total input bytes per grid step


def get_current_consistency_weight(epoch):
    # jnp-based so a traced `epoch` under jit also works.
    e = jnp.asarray(epoch, jnp.float32)
    phase = 1.0 - jnp.clip(e, 0.0, CONSISTENCY_RAMPUP) / CONSISTENCY_RAMPUP
    return CONSISTENCY * jnp.exp(-5.0 * phase * phase)


# ---------------------------------------------------------------------------
# In-kernel helpers (operate on one spatial-column tile)
# ---------------------------------------------------------------------------
def _pair_block_sums(p, t):
    """p, t: (R, TS) f32 -> (R, 3) = [sum(p*t), sum(p), sum(t)] per row."""
    inter = jnp.sum(p * t, axis=-1, keepdims=True)
    psum = jnp.sum(p, axis=-1, keepdims=True)
    tsum = jnp.sum(t, axis=-1, keepdims=True)
    return jnp.concatenate([inter, psum, tsum], axis=-1)


def _consis_block_sums(prop):
    """prop: (B, 3, TS) f32 -> (B, 3) = [sum(mid*fgt), sum(mid), sum(fgt)]
    with fgt = 0.5*(p0 + p2) materialized once (3 XLU reductions, not 5)."""
    p0 = prop[:, 0, :]
    mid = prop[:, 1, :]
    p2 = prop[:, 2, :]
    fgt = 0.5 * (p0 + p2)
    inter = jnp.sum(mid * fgt, axis=-1, keepdims=True)
    msum = jnp.sum(mid, axis=-1, keepdims=True)
    fsum = jnp.sum(fgt, axis=-1, keepdims=True)
    return jnp.concatenate([inter, msum, fsum], axis=-1)


# ---------------------------------------------------------------------------
# Kernel bodies
# ---------------------------------------------------------------------------
def _make_fused_kernel(n_props):
    def kernel(*refs):
        p_ref, t_ref = refs[0], refs[1]
        prop_refs = refs[2:2 + n_props]
        main_ref = refs[2 + n_props]
        consis_ref = refs[3 + n_props]
        main_ref[...] = _pair_block_sums(p_ref[...].astype(jnp.float32),
                                         t_ref[...].astype(jnp.float32))[None]
        for n, pr in enumerate(prop_refs):          # static python loop
            consis_ref[0, n] = _consis_block_sums(pr[...].astype(jnp.float32))
    return kernel


def _pair_kernel(p_ref, t_ref, out_ref):
    out_ref[...] = _pair_block_sums(p_ref[...].astype(jnp.float32),
                                    t_ref[...].astype(jnp.float32))[None]


def _make_consis_kernel(n_props):
    def kernel(*refs):
        prop_refs = refs[:n_props]
        consis_ref = refs[n_props]
        for n, pr in enumerate(prop_refs):
            consis_ref[0, n] = _consis_block_sums(pr[...].astype(jnp.float32))
    return kernel


# ---------------------------------------------------------------------------
# Wrappers
# ---------------------------------------------------------------------------
def _pick_col_tile(S, bytes_per_col):
    """Largest multiple-of-128 divisor of S under the byte budget (else S)."""
    if S % 128 != 0:
        return S  # full-dim block is the only legal non-128-multiple choice
    max_cols = max(128, (_TARGET_BLOCK_BYTES // max(bytes_per_col, 1)) // 128 * 128)
    if S <= max_cols:
        return S
    t = min(max_cols, S)
    while t >= 128:
        if S % t == 0:
            return t
        t -= 128
    # TODO(synk): no 128-multiple divisor fits the budget; fall back to full S.
    return S


def _compiler_params():
    return pltpu.CompilerParams(dimension_semantics=("parallel",),
                                vmem_limit_bytes=_VMEM_LIMIT)


def _fused_partials(p2d, t2d, props3d):
    """One launch: main-dice row sums + per-(prop, batch) consis sums."""
    R, S = p2d.shape
    n_props = len(props3d)
    Bp = props3d[0].shape[0]
    bpc = (p2d.dtype.itemsize + t2d.dtype.itemsize) * R \
        + sum(pr.dtype.itemsize * 3 * Bp for pr in props3d)
    ts = _pick_col_tile(S, bpc)
    nct = S // ts
    in_specs = [pl.BlockSpec((R, ts), lambda j: (0, j)),
                pl.BlockSpec((R, ts), lambda j: (0, j))]
    in_specs += [pl.BlockSpec((Bp, 3, ts), lambda j: (0, 0, j))
                 for _ in range(n_props)]
    main_p, consis_p = pl.pallas_call(
        _make_fused_kernel(n_props),
        out_shape=(jax.ShapeDtypeStruct((nct, R, 3), jnp.float32),
                   jax.ShapeDtypeStruct((nct, n_props, Bp, 3), jnp.float32)),
        grid_spec=pltpu.PrefetchScalarGridSpec(
            num_scalar_prefetch=0,
            grid=(nct,),
            in_specs=in_specs,
            out_specs=(pl.BlockSpec((1, R, 3), lambda j: (j, 0, 0)),
                       pl.BlockSpec((1, n_props, Bp, 3),
                                    lambda j: (j, 0, 0, 0)))),
        compiler_params=_compiler_params(),
    )(p2d, t2d, *props3d)
    main_sums = jnp.sum(main_p, axis=0)                      # (R, 3)
    consis_sums = jnp.sum(consis_p, axis=0).reshape(-1, 3)   # (n_props*Bp, 3)
    return main_sums, consis_sums


def _pair_partials(p2d, t2d):
    R, S = p2d.shape
    bpc = (p2d.dtype.itemsize + t2d.dtype.itemsize) * R
    ts = _pick_col_tile(S, bpc)
    nct = S // ts
    out = pl.pallas_call(
        _pair_kernel,
        out_shape=jax.ShapeDtypeStruct((nct, R, 3), jnp.float32),
        grid_spec=pltpu.PrefetchScalarGridSpec(
            num_scalar_prefetch=0,
            grid=(nct,),
            in_specs=[pl.BlockSpec((R, ts), lambda j: (0, j)),
                      pl.BlockSpec((R, ts), lambda j: (0, j))],
            out_specs=pl.BlockSpec((1, R, 3), lambda j: (j, 0, 0))),
        compiler_params=_compiler_params(),
    )(p2d, t2d)
    return jnp.sum(out, axis=0)


def _consis_partials(props3d):
    n_props = len(props3d)
    Bp, _, S = props3d[0].shape
    bpc = sum(pr.dtype.itemsize * 3 * Bp for pr in props3d)
    ts = _pick_col_tile(S, bpc)
    nct = S // ts
    in_specs = [pl.BlockSpec((Bp, 3, ts), lambda j: (0, 0, j))
                for _ in range(n_props)]
    out = pl.pallas_call(
        _make_consis_kernel(n_props),
        out_shape=jax.ShapeDtypeStruct((nct, n_props, Bp, 3), jnp.float32),
        grid_spec=pltpu.PrefetchScalarGridSpec(
            num_scalar_prefetch=0,
            grid=(nct,),
            in_specs=in_specs,
            out_specs=pl.BlockSpec((1, n_props, Bp, 3),
                                   lambda j: (j, 0, 0, 0))),
        compiler_params=_compiler_params(),
    )(*props3d)
    return jnp.sum(out, axis=0).reshape(-1, 3)


def _dice_from_sums(sums):
    """sums: (R, 3) [inter, a_sum, b_sum] -> per-row dice loss (R,)."""
    inter, asum, bsum = sums[:, 0], sums[:, 1], sums[:, 2]
    return 1.0 - (2.0 * inter + SMOOTH_NR) / (asum + bsum + SMOOTH_DR)


# ---------------------------------------------------------------------------
# Full DiceConsisLoss.forward
# ---------------------------------------------------------------------------
def dice_consis_loss(pred, target, epoch):
    """pred = (final_pred, slice_prop_list); target: (B, C, H, W)."""
    final_pred, slice_prop = pred[0], pred[1]
    B, C, H, W = final_pred.shape

    # Free, lane-dense reshapes (no data movement).
    p2d = final_pred.reshape(B * C, H * W)
    t2d = target.reshape(B * C, H * W)
    props3d = [sp.reshape(sp.shape[0], 3, sp.shape[2] * sp.shape[3])
               for sp in slice_prop]
    n_props = len(props3d)

    same_shapes = (len({sp.shape for sp in slice_prop}) == 1
                   and slice_prop[0].shape[2:] == (H, W))
    if same_shapes:
        # Common case: everything shares (H, W) -> single fused launch.
        main_sums, consis_sums = _fused_partials(p2d, t2d, props3d)
        Bp = props3d[0].shape[0]
        per_prop = jnp.mean(_dice_from_sums(consis_sums).reshape(n_props, Bp),
                            axis=1)                    # (n_props,)
        aux = jnp.mean(per_prop)
    else:
        # Rare fallback: main dice in one call, props grouped by shape.
        main_sums = _pair_partials(p2d, t2d)
        groups = {}
        for sp3 in props3d:
            groups.setdefault(sp3.shape, []).append(sp3)
        per_prop_means = []
        for g in groups.values():
            sums = _consis_partials(g)                 # (len(g)*Bp_g, 3)
            d = _dice_from_sums(sums).reshape(len(g), -1)
            per_prop_means.append(jnp.mean(d, axis=1))
        # sum_i mean_b(dice_i) / n_props, exactly as the PyTorch sum()/len().
        aux = jnp.sum(jnp.concatenate(per_prop_means)) / n_props

    # MONAI include_background=False: drop channel 0 only when C > 1.
    dice_bc = _dice_from_sums(main_sums).reshape(B, C)
    if C > 1:
        dice_bc = dice_bc[:, 1:]
    dice_loss = jnp.mean(dice_bc)

    consis_loss = get_current_consistency_weight(epoch) * aux
    # TODO(synk): forward pass only; wrap in jax.custom_vjp if grads needed.
    return dice_loss + consis_loss


if __name__ == "__main__":
    key = jax.random.PRNGKey(0)
    k1, k2, k3, k4 = jax.random.split(key, 4)

    B, C, H, W = 2, 4, 16, 16
    final_pred = jax.nn.sigmoid(jax.random.normal(k1, (B, C, H, W), jnp.float32))
    target = (jax.random.uniform(k2, (B, C, H, W)) > 0.5).astype(jnp.float32)
    slice_prop = [
        jax.nn.sigmoid(jax.random.normal(k3, (B, 3, H, W), jnp.float32)),
        jax.nn.sigmoid(jax.random.normal(k4, (B, 3, H, W), jnp.float32)),
    ]
    epoch = 10

    loss = jax.jit(dice_consis_loss)((final_pred, slice_prop), target, epoch)
    jax.block_until_ready(loss)
    print("KERNEL_OK")
</pallas_src>

<mosaic_0001>
module attributes {stable_mosaic.version = 11 : i64} {
  func.func @kernel(%arg0: i32, %arg1: memref<8x256xf32, #tpu.memory_space<vmem>>, %arg2: memref<8x256xf32, #tpu.memory_space<vmem>>, %arg3: memref<2x3x256xf32, #tpu.memory_space<vmem>>, %arg4: memref<2x3x256xf32, #tpu.memory_space<vmem>>, %arg5: memref<1x8x3xf32, #tpu.memory_space<vmem>>, %arg6: memref<1x2x2x3xf32, #tpu.memory_space<vmem>>) attributes {dimension_semantics = [#tpu.dimension_semantics<parallel>], iteration_bounds = array<i64: 1>, scalar_prefetch = 0 : i64, scratch_operands = 0 : i64, tpu.core_type = #tpu.core_type<tc>, window_params = [{transform_indices = @transform_0, window_bounds = array<i64: 8, 256>}, {transform_indices = @transform_1, window_bounds = array<i64: 8, 256>}, {transform_indices = @transform_2, window_bounds = array<i64: 2, 3, 256>}, {transform_indices = @transform_3, window_bounds = array<i64: 2, 3, 256>}, {transform_indices = @transform_4, window_bounds = array<i64: 1, 8, 3>}, {transform_indices = @transform_5, window_bounds = array<i64: 1, 2, 2, 3>}]} {
    %c0 = arith.constant 0 : index
    %c0_0 = arith.constant 0 : index
    %0 = vector.load %arg1[%c0, %c0_0] : memref<8x256xf32, #tpu.memory_space<vmem>>, vector<8x256xf32>
    %c0_1 = arith.constant 0 : index
    %c0_2 = arith.constant 0 : index
    %1 = vector.load %arg2[%c0_1, %c0_2] : memref<8x256xf32, #tpu.memory_space<vmem>>, vector<8x256xf32>
    %2 = arith.mulf %0, %1 : vector<8x256xf32>
    %cst = arith.constant dense<0.000000e+00> : vector<8xf32>
    %3 = vector.multi_reduction <add>, %2, %cst [1] : vector<8x256xf32> to vector<8xf32>
    %4 = vector.shape_cast %3 : vector<8xf32> to vector<8x1xf32>
    %cst_3 = arith.constant dense<0.000000e+00> : vector<8xf32>
    %5 = vector.multi_reduction <add>, %0, %cst_3 [1] : vector<8x256xf32> to vector<8xf32>
    %6 = vector.shape_cast %5 : vector<8xf32> to vector<8x1xf32>
    %cst_4 = arith.constant dense<0.000000e+00> : vector<8xf32>
    %7 = vector.multi_reduction <add>, %1, %cst_4 [1] : vector<8x256xf32> to vector<8xf32>
    %8 = vector.shape_cast %7 : vector<8xf32> to vector<8x1xf32>
    %9 = tpu.concatenate %4, %6, %8 in 1 : vector<8x1xf32>, vector<8x1xf32>, vector<8x1xf32> -> vector<8x3xf32>
    %10 = vector.shape_cast %9 : vector<8x3xf32> to vector<1x8x3xf32>
    %c0_5 = arith.constant 0 : index
    %c0_6 = arith.constant 0 : index
    %c0_7 = arith.constant 0 : index
    %11 = vector.load %arg5[%c0_5, %c0_6, %c0_7] : memref<1x8x3xf32, #tpu.memory_space<vmem>>, vector<1x8x3xf32>
    tpu.vector_store %arg5[%c0_5, %c0_6, %c0_7], %10 {strides = array<i32>} : memref<1x8x3xf32, #tpu.memory_space<vmem>>, vector<1x8x3xf32>,
    %c0_8 = arith.constant 0 : index
    %c0_9 = arith.constant 0 : index
    %c0_10 = arith.constant 0 : index
    %12 = vector.load %arg3[%c0_8, %c0_9, %c0_10] : memref<2x3x256xf32, #tpu.memory_space<vmem>>, vector<2x3x256xf32>
    %13 = vector.extract_strided_slice %12 {offsets = [0, 0, 0], sizes = [2, 1, 256], strides = [1, 1, 1]} : vector<2x3x256xf32> to vector<2x1x256xf32>
    %14 = vector.shape_cast %13 : vector<2x1x256xf32> to vector<2x256xf32>
    %15 = vector.extract_strided_slice %12 {offsets = [0, 1, 0], sizes = [2, 1, 256], strides = [1, 1, 1]} : vector<2x3x256xf32> to vector<2x1x256xf32>
    %16 = vector.shape_cast %15 : vector<2x1x256xf32> to vector<2x256xf32>
    %17 = vector.extract_strided_slice %12 {offsets = [0, 2, 0], sizes = [2, 1, 256], strides = [1, 1, 1]} : vector<2x3x256xf32> to vector<2x1x256xf32>
    %18 = vector.shape_cast %17 : vector<2x1x256xf32> to vector<2x256xf32>
    %19 = arith.addf %14, %18 : vector<2x256xf32>
    %cst_11 = arith.constant 5.000000e-01 : f32
    %20 = vector.broadcast %cst_11 : f32 to vector<2x256xf32>
    %21 = arith.mulf %20, %19 : vector<2x256xf32>
    %22 = arith.mulf %16, %21 : vector<2x256xf32>
    %cst_12 = arith.constant dense<0.000000e+00> : vector<2xf32>
    %23 = vector.multi_reduction <add>, %22, %cst_12 [1] : vector<2x256xf32> to vector<2xf32>
    %24 = vector.shape_cast %23 : vector<2xf32> to vector<2x1xf32>
    %cst_13 = arith.constant dense<0.000000e+00> : vector<2xf32>
    %25 = vector.multi_reduction <add>, %16, %cst_13 [1] : vector<2x256xf32> to vector<2xf32>
    %26 = vector.shape_cast %25 : vector<2xf32> to vector<2x1xf32>
    %cst_14 = arith.constant dense<0.000000e+00> : vector<2xf32>
    %27 = vector.multi_reduction <add>, %21, %cst_14 [1] : vector<2x256xf32> to vector<2xf32>
    %28 = vector.shape_cast %27 : vector<2xf32> to vector<2x1xf32>
    %29 = tpu.concatenate %24, %26, %28 in 1 : vector<2x1xf32>, vector<2x1xf32>, vector<2x1xf32> -> vector<2x3xf32>
    %c0_15 = arith.constant 0 : index
    %c0_16 = arith.constant 0 : index
    %c0_17 = arith.constant 0 : index
    %c0_18 = arith.constant 0 : index
    %30 = vector.load %arg6[%c0_15, %c0_16, %c0_17, %c0_18] : memref<1x2x2x3xf32, #tpu.memory_space<vmem>>, vector<1x1x2x3xf32>
    %31 = vector.shape_cast %30 : vector<1x1x2x3xf32> to vector<2x3xf32>
    %32 = vector.shape_cast %29 : vector<2x3xf32> to vector<1x1x2x3xf32>
    tpu.vector_store %arg6[%c0_15, %c0_16, %c0_17, %c0_18], %32 {strides = array<i32>} : memref<1x2x2x3xf32, #tpu.memory_space<vmem>>, vector<1x1x2x3xf32>,
    %c0_19 = arith.constant 0 : index
    %c0_20 = arith.constant 0 : index
    %c0_21 = arith.constant 0 : index
    %33 = vector.load %arg4[%c0_19, %c0_20, %c0_21] : memref<2x3x256xf32, #tpu.memory_space<vmem>>, vector<2x3x256xf32>
    %34 = vector.extract_strided_slice %33 {offsets = [0, 0, 0], sizes = [2, 1, 256], strides = [1, 1, 1]} : vector<2x3x256xf32> to vector<2x1x256xf32>
    %35 = vector.shape_cast %34 : vector<2x1x256xf32> to vector<2x256xf32>
    %36 = vector.extract_strided_slice %33 {offsets = [0, 1, 0], sizes = [2, 1, 256], strides = [1, 1, 1]} : vector<2x3x256xf32> to vector<2x1x256xf32>
    %37 = vector.shape_cast %36 : vector<2x1x256xf32> to vector<2x256xf32>
    %38 = vector.extract_strided_slice %33 {offsets = [0, 2, 0], sizes = [2, 1, 256], strides = [1, 1, 1]} : vector<2x3x256xf32> to vector<2x1x256xf32>
    %39 = vector.shape_cast %38 : vector<2x1x256xf32> to vector<2x256xf32>
    %40 = arith.addf %35, %39 : vector<2x256xf32>
    %cst_22 = arith.constant 5.000000e-01 : f32
    %41 = vector.broadcast %cst_22 : f32 to vector<2x256xf32>
    %42 = arith.mulf %41, %40 : vector<2x256xf32>
    %43 = arith.mulf %37, %42 : vector<2x256xf32>
    %cst_23 = arith.constant dense<0.000000e+00> : vector<2xf32>
    %44 = vector.multi_reduction <add>, %43, %cst_23 [1] : vector<2x256xf32> to vector<2xf32>
    %45 = vector.shape_cast %44 : vector<2xf32> to vector<2x1xf32>
    %cst_24 = arith.constant dense<0.000000e+00> : vector<2xf32>
    %46 = vector.multi_reduction <add>, %37, %cst_24 [1] : vector<2x256xf32> to vector<2xf32>
    %47 = vector.shape_cast %46 : vector<2xf32> to vector<2x1xf32>
    %cst_25 = arith.constant dense<0.000000e+00> : vector<2xf32>
    %48 = vector.multi_reduction <add>, %42, %cst_25 [1] : vector<2x256xf32> to vector<2xf32>
    %49 = vector.shape_cast %48 : vector<2xf32> to vector<2x1xf32>
    %50 = tpu.concatenate %45, %47, %49 in 1 : vector<2x1xf32>, vector<2x1xf32>, vector<2x1xf32> -> vector<2x3xf32>
    %c0_26 = arith.constant 0 : index
    %c1 = arith.constant 1 : index
    %c0_27 = arith.constant 0 : index
    %c0_28 = arith.constant 0 : index
    %51 = vector.load %arg6[%c0_26, %c1, %c0_27, %c0_28] : memref<1x2x2x3xf32, #tpu.memory_space<vmem>>, vector<1x1x2x3xf32>
    %52 = vector.shape_cast %51 : vector<1x1x2x3xf32> to vector<2x3xf32>
    %53 = vector.shape_cast %50 : vector<2x3xf32> to vector<1x1x2x3xf32>
    tpu.vector_store %arg6[%c0_26, %c1, %c0_27, %c0_28], %53 {strides = array<i32>} : memref<1x2x2x3xf32, #tpu.memory_space<vmem>>, vector<1x1x2x3xf32>,
    return
  }
  func.func @transform_0(%arg0: i32) -> (i32, i32) {
    %c0_i32 = arith.constant 0 : i32
    %c0_i32_0 = arith.constant 0 : i32
    return %c0_i32, %arg0 : i32, i32
  }
  func.func @transform_1(%arg0: i32) -> (i32, i32) {
    %c0_i32 = arith.constant 0 : i32
    %c0_i32_0 = arith.constant 0 : i32
    return %c0_i32, %arg0 : i32, i32
  }
  func.func @transform_2(%arg0: i32) -> (i32, i32, i32) {
    %c0_i32 = arith.constant 0 : i32
    %c0_i32_0 = arith.constant 0 : i32
    %c0_i32_1 = arith.constant 0 : i32
    return %c0_i32, %c0_i32_0, %arg0 : i32, i32, i32
  }
  func.func @transform_3(%arg0: i32) -> (i32, i32, i32) {
    %c0_i32 = arith.constant 0 : i32
    %c0_i32_0 = arith.constant 0 : i32
    %c0_i32_1 = arith.constant 0 : i32
    return %c0_i32, %c0_i32_0, %arg0 : i32, i32, i32
  }
  func.func @transform_4(%arg0: i32) -> (i32, i32, i32) {
    %c0_i32 = arith.constant 0 : i32
    %c0_i32_0 = arith.constant 0 : i32
    %c0_i32_1 = arith.constant 0 : i32
    return %arg0, %c0_i32, %c0_i32_0 : i32, i32, i32
  }
  func.func @transform_5(%arg0: i32) -> (i32, i32, i32, i32) {
    %c0_i32 = arith.constant 0 : i32
    %c0_i32_0 = arith.constant 0 : i32
    %c0_i32_1 = arith.constant 0 : i32
    %c0_i32_2 = arith.constant 0 : i32
    return %arg0, %c0_i32, %c0_i32_0, %c0_i32_1 : i32, i32, i32, i32
  }
}

</mosaic_0001>

<bundles_post_ra>
// kernel: dice_consis_loss.1
= control target key start
LH: loop header
LB: loop body
LE: loop exit
PB: predicated region body
PF: predicated region fallthrough
CT: control target
= control target key end

     0   :  { %v64_v0 = vlaneseq  ;;  %vm132_vm0 = vcmask 1041409   ;;  %vm137_vm1 = vcmask 1041408   ;;  %vm80_vm2 = vcmask 1042434   ;;  %s401_s0 = inlined_call_operand.vmem [shape: f32[8,256], index: 0, kind: input, shape index: {}]   ;;  %s402_s1 = inlined_call_operand.vmem [shape: f32[8,256], index: 1, kind: input, shape index: {}]   ;;  %s403_s2 = inlined_call_operand.vmem [shape: f32[2,3,256], index: 2, kind: input, shape index: {}]   ;;  %s404_s3 = inlined_call_operand.vmem [shape: f32[2,3,256], index: 3, kind: input, shape index: {}]   ;;  %s405_s5 = inlined_call_operand.vmem [shape: f32[1,2,2,3], index: 5, kind: output, shape index: {1}]   ;;  %s406_s4 = inlined_call_operand.vmem [shape: f32[1,8,3], index: 4, kind: output, shape index: {0}]  }
   0x1   :  { %v19_v1 = vld [vmem:[%s401_s0] sm:$0xff]  ;;  %v20_v2 = vld [vmem:[%s401_s0 + $0x8] sm:$0xff]  ;;  %vm85_vm3 = vcmask 1042433   ;;  %vm36_vm4 = vcmask 15360   ;;  %vm34_vm5 = vcmask 7168   ;;  %vm148_vm6 = vcmask 18433  }
   0x2   :  { %v308_v3 = vld [vmem:[%s402_s1] sm:$0xff]  ;;  %v313_v4 = vld [vmem:[%s402_s1 + $0x8] sm:$0xff]  ;;  %v28_v5 = vadd.f32 %v20_v2, %v19_v1  ;;  %v65_v9 = vshrl.u32 %v64_v0, 7  ;;  %vm38_vm7 = vcmask 23552  }
   0x3   :  { %v23_v6 = vmul.f32 %v308_v3, %v19_v1  ;;  %v40_v7 = vld [vmem:[%s403_s2] sm:$0x77]  ;;  %v41_v8 = vld [vmem:[%s403_s2 + $0x8] sm:$0x77]  ;;  %v24_v10 = vmul.f32 %v313_v4, %v20_v2 }
   0x4   :  { %v264_v11 = vrot.slane %v40_v7, 10  ;;  %v265_v12 = vrot.slane %v41_v8, 10  ;;  %v326_v13 = vld [vmem:[%s404_s3] sm:$0x77]  ;;  %v331_v14 = vld [vmem:[%s404_s3 + $0x8] sm:$0x77]  ;;  %29 = vadd.xlane.f32.xlu1 %v28_v5 }
   0x5   :  { %v333_v15 = vsub.s32 1, %v65_v9  ;;  %v335_v16 = vsub.s32 5, %v65_v9  ;;  %v118_v17 = vsub.s32 0, %v65_v9  ;;  %v122_v18 = vsub.s32 4, %v65_v9 }
   0x6   :  { %v50_v19 = vadd.f32 %v264_v11, %v40_v7  ;;  %v51_v20 = vadd.f32 %v265_v12, %v41_v8  ;;  %v25_v21 = vadd.f32 %v24_v10, %v23_v6  ;;  %v266_v22 = vrot.slane %v326_v13, 10 }
   0x7   :  { %v267_v23 = vrot.slane %v331_v14, 10  ;;  %v94_v24 = vrot.slane %v40_v7, %v333_v15  ;;  %v98_v25 = vrot.slane %v40_v7, %v335_v16  ;;  %v102_v26 = vrot.slane %v41_v8, %v333_v15 }
   0x8   :  { %v52_v27 = vmul.f32 0.5, %v50_v19  ;;  %v53_v28 = vmul.f32 0.5, %v51_v20  ;;  %v160_v29 = vadd.f32 %v266_v22, %v326_v13  ;;  %v106_v30 = vrot.slane %v41_v8, %v335_v16  ;;  %26 = vadd.xlane.f32.xlu1 %v25_v21 }
   0x9   :  { %v161_v31 = vadd.f32 %v267_v23, %v331_v14  ;;  %v107_v32 = vsel %vm80_vm2, %v102_v26, %v94_v24  ;;  %v202_v33 = vrot.slane %v326_v13, %v333_v15  ;;  %v206_v34 = vrot.slane %v326_v13, %v335_v16 }
   0xa   :  { %v119_v35 = vrot.slane %v52_v27, %v118_v17  ;;  %v123_v36 = vrot.slane %v52_v27, %v122_v18  ;;  %v127_v37 = vrot.slane %v53_v28, %v118_v17  ;;  %v131_v38 = vrot.slane %v53_v28, %v122_v18 }
   0xb   :  { %v162_v39 = vmul.f32 0.5, %v160_v29  ;;  %v163_v40 = vmul.f32 0.5, %v161_v31  ;;  %v56_v41 = vrot.slane %v52_v27, 7  ;;  %v57_v42 = vrot.slane %v53_v28, 7 }
   0xc   :  { %v133_v43 = vsel %vm132_vm0, %v127_v37, %v119_v35  ;;  %v134_v44 = vsel %vm132_vm0, %v131_v38, %v123_v36  ;;  %v108_v45 = vsel %vm80_vm2, %v106_v30, %v98_v25  ;;  %v111_v46 = vsel %vm85_vm3, %v107_v32, 0.0 }
   0xd   :  { %v138_v47 = vsel %vm137_vm1, %v133_v43, 0.0  ;;  %v139_v48 = vsel %vm137_vm1, %v134_v44, 0.0  ;;  %v227_v49 = vrot.slane %v162_v39, %v118_v17  ;;  %v231_v50 = vrot.slane %v162_v39, %v122_v18 }
   0xe   :  { %v140_v51 = vadd.f32 %v139_v48, %v138_v47  ;;  %v235_v52 = vrot.slane %v163_v40, %v118_v17  ;;  %v239_v53 = vrot.slane %v163_v40, %v122_v18  ;;  %v60_v54 = vmul.f32 %v56_v41, %v40_v7 }
   0xf   :  { %v61_v55 = vmul.f32 %v57_v42, %v41_v8  ;;  %v112_v56 = vsel %vm85_vm3, %v108_v45, 0.0  ;;  %v166_v57 = vrot.slane %v162_v39, 7  ;;  %v167_v58 = vrot.slane %v163_v40, 7 }
  0x10   :  { %141 = vadd.xlane.f32.xlu0 %v140_v51  ;;  %v240_v59 = vsel %vm132_vm0, %v235_v52, %v227_v49  ;;  %v241_v60 = vsel %vm132_vm0, %v239_v53, %v231_v50  ;;  %v67_v61 = vrot.slane %v60_v54, %v333_v15  ;;  %v71_v62 = vrot.slane %v60_v54, %v335_v16 }
  0x11   :  { %v244_v63 = vsel %vm137_vm1, %v240_v59, 0.0  ;;  %v245_v0 = vsel %vm137_vm1, %v241_v60, 0.0  ;;  %v75_v1 = vrot.slane %v61_v55, %v333_v15  ;;  %v79_v2 = vrot.slane %v61_v55, %v335_v16 }
  0x12   :  { %v246_v5 = vadd.f32 %v245_v0, %v244_v63  ;;  %v113_v6 = vadd.f32 %v112_v56, %v111_v46  ;;  %v170_v7 = vmul.f32 %v166_v57, %v326_v13  ;;  %v171_v8 = vmul.f32 %v167_v58, %v331_v14 }
  0x13   :  { %v81_v9 = vsel %vm80_vm2, %v75_v1, %v67_v61  ;;  %v82_v10 = vsel %vm80_vm2, %v79_v2, %v71_v62  ;;  %v210_v11 = vrot.slane %v331_v14, %v333_v15  ;;  %v214_v12 = vrot.slane %v331_v14, %v335_v16 }
  0x14   :  { %247 = vadd.xlane.f32.xlu0 %v246_v5  ;;  %v86_v17 = vsel %vm85_vm3, %v81_v9, 0.0  ;;  %v87_v18 = vsel %vm85_vm3, %v82_v10, 0.0  ;;  %114 = vadd.xlane.f32.xlu1 %v113_v6  ;;  %v177_v13 = vrot.slane %v170_v7, %v333_v15  ;;  %v181_v19 = vrot.slane %v170_v7, %v335_v16 }
  0x15   :  { %v88_v20 = vadd.f32 %v87_v18, %v86_v17  ;;  %v185_v21 = vrot.slane %v171_v8, %v333_v15  ;;  %v189_v22 = vrot.slane %v171_v8, %v335_v16  ;;  %v215_v23 = vsel %vm80_vm2, %v210_v11, %v202_v33 }
  0x16   :  { %v216_v24 = vsel %vm80_vm2, %v214_v12, %v206_v34  ;;  %v219_v14 = vsel %vm85_vm3, %v215_v23, 0.0  ;;  %v31_v16 = vadd.f32 %v313_v4, %v308_v3 }
  0x17   :  { %v190_v25 = vsel %vm80_vm2, %v185_v21, %v177_v13  ;;  %v191_v26 = vsel %vm80_vm2, %v189_v22, %v181_v19  ;;  %v220_v27 = vsel %vm85_vm3, %v216_v24, 0.0 }
  0x18   :  { %89 = vadd.xlane.f32.xlu0 %v88_v20  ;;  %v194_v28 = vsel %vm85_vm3, %v190_v25, 0.0  ;;  %v195_v29 = vsel %vm85_vm3, %v191_v26, 0.0  ;;  %v221_v15 = vadd.f32 %v220_v27, %v219_v14 }
  0x19   :  { %v196_v30 = vadd.f32 %v195_v29, %v194_v28 }
  0x1a   :  { %222 = vadd.xlane.f32.xlu1 %v221_v15 }
  0x1c   :  { %197 = vadd.xlane.f32.xlu0 %v196_v30 }
  0x20   :  { %32 = vadd.xlane.f32.xlu0 %v31_v16 }
  0x8d   :  { %v30_v31 = vpop.xlane.xlu1 %29 }
  0x91   :  { %v27_v32 = vpop.xlane.xlu1 %26 }
  0x92   :  { %v35_v43 = vsel %vm34_vm5, %v27_v32, %v30_v31 }
  0x99   :  { %v142_v33 = vpop.xlane.xlu0 %141 }
  0x9a   :  { %v144_v36 = vrot.slane %v142_v33, 7 }
  0x9d   :  { %v248_v34 = vpop.xlane.xlu0 %247  ;;  %v115_v35 = vpop.xlane.xlu1 %114 }
  0x9e   :  { %v250_v3 = vrot.slane %v248_v34, 7 }
  0xa1   :  { %v90_v37 = vpop.xlane.xlu0 %89 }
  0xa2   :  { %v146_v38 = vsel %vm34_vm5, %v90_v37, %v115_v35 }
  0xa3   :  { %v147_v39 = vsel %vm36_vm4, %v146_v38, %v144_v36  ;;  %v223_v40 = vpop.xlane.xlu1 %222 }
  0xa4   :  { %149 = vst.msk [vmem:[%s405_s5 - $0x1] sm:$0x6] %vm148_vm6, %v147_v39 }
  0xa5   :  { %v198_v4 = vpop.xlane.xlu0 %197 }
  0xa6   :  { %v252_v41 = vsel %vm34_vm5, %v198_v4, %v223_v40 }
  0xa7   :  { %v253_v42 = vsel %vm36_vm4, %v252_v41, %v250_v3 }
  0xa8   :  { %268 = vst.msk [vmem:[%s405_s5 + $0x1] sm:$0x6] %vm148_vm6, %v253_v42 }
  0xa9   :  { %v33_v44 = vpop.xlane.xlu0 %32 }
  0xaa   :  { %v37_v45 = vsel %vm36_vm4, %v35_v43, %v33_v44 }
  0xab   :  { %39 = vst.msk [vmem:[%s406_s4] sm:$0xff] %vm38_vm7, %v37_v45 }

</bundles_post_ra>
